<compile_context>
chip_gen: v7x
topology: tpu7x:2x2x1
jax: 0.10.0
libtpu: 0.0.40
codegen_flags: <defaults>
</compile_context>

<pallas_src>
import functools

import jax
import jax.numpy as jnp
from jax.experimental import pallas as pl
from jax.experimental.pallas import tpu as pltpu


def _int_pow(x, g):
    """Integer power via repeated multiply (VPU only; avoids pow's log+exp)."""
    g = int(g)
    acc = None
    base = x
    while g > 0:
        if g & 1:
            acc = base if acc is None else acc * base
        g >>= 1
        if g:
            base = base * base
    if acc is None:  # g == 0
        return jnp.ones_like(x)
    return acc


def _focal_loss_kernel(logits_ref, targets_ref, out_ref, acc_ref, *,
                       n_true, tile_n, tiles_per_split, alpha, gamma,
                       lane_pack, keep_bf16):
    s = pl.program_id(0)          # split axis (CORE_PARALLEL on v7x)
    t = pl.program_id(1)          # reduction over row tiles ("arbitrary", last)

    @pl.when(t == 0)
    def _():
        acc_ref[...] = jnp.zeros_like(acc_ref)

    x = logits_ref[...]                                   # (TILE_N, C)
    if not keep_bf16:
        x = x.astype(jnp.float32)
    tgt = targets_ref[...]                                # (TILE_N, 1) int32
    tn, c = x.shape

    # Numerically-stable softmax cross entropy, single (TILE_N, C) exp pass.
    row_max = jnp.max(x, axis=-1, keepdims=True)                          # (TILE_N, 1)
    shifted = x - row_max                                                 # (TILE_N, C)
    exps = jnp.exp(shifted.astype(jnp.float32))                           # (TILE_N, C) f32
    sumexp = jnp.sum(exps, axis=-1, keepdims=True)                        # (TILE_N, 1) f32

    # Target logit via a (1, C) iota broadcast against (TILE_N, 1) targets.
    class_ids = jax.lax.broadcasted_iota(jnp.int32, (1, c), 1)
    is_tgt = class_ids == tgt                                             # (TILE_N, C)
    tgt_shifted = jnp.sum(jnp.where(is_tgt, shifted, 0), axis=-1,
                          keepdims=True).astype(jnp.float32)              # (TILE_N, 1)

    row_start = (s * tiles_per_split + t) * tile_n

    # Relayout the per-row stats to lane-dense form so the per-row chain
    # (log, ce, exp, pow, mul, mask, accumulate) runs at full lane density.
    if lane_pack:
        sub = tile_n // 128
        sumexp = sumexp.reshape(sub, 128)
        tgt_shifted = tgt_shifted.reshape(sub, 128)

    ce = jnp.log(sumexp) - tgt_shifted                                    # >= 0
    pt = jnp.exp(-ce)                                                     # == softmax prob of target
    one_minus_pt = jnp.maximum(1.0 - pt, 0.0)

    if float(gamma) == int(gamma) and gamma >= 0:
        weight = _int_pow(one_minus_pt, int(gamma))
    else:
        # TODO(synk): non-integer gamma falls back to float-exponent pow.
        weight = one_minus_pt ** gamma

    focal = alpha * weight * ce

    # Accumulate lane-dense partial sums; mask padded tail rows only on tiles
    # that actually contain them (common-path tiles skip the mask entirely).
    needs_mask = (row_start + tile_n) > n_true

    if lane_pack:
        sub = tile_n // 128

        @pl.when(needs_mask)
        def _():
            rid = row_start + (
                jax.lax.broadcasted_iota(jnp.int32, (sub, 128), 0) * 128
                + jax.lax.broadcasted_iota(jnp.int32, (sub, 128), 1))
            acc_ref[...] += jnp.where(rid < n_true, focal, 0.0)

        @pl.when(jnp.logical_not(needs_mask))
        def _():
            acc_ref[...] += focal
    else:
        # Fallback column path (tile_n not a multiple of 128).
        rid = row_start + jax.lax.broadcasted_iota(jnp.int32, (tn, 1), 0)
        masked = jnp.where(rid < n_true, focal, 0.0)
        acc_ref[...] += jnp.sum(masked, axis=0, keepdims=True)

    @pl.when(t == tiles_per_split - 1)
    def _():
        # Collapse to a scalar only once per split; single lane-dense (8,128)
        # output store. Wrapper reads [0, 0] of each split block.
        part = jnp.sum(acc_ref[...], axis=1, keepdims=True)
        part = jnp.sum(part, axis=0, keepdims=True)
        out_ref[...] = jnp.broadcast_to(part, out_ref.shape)


def _device_kind():
    try:
        return jax.devices()[0].device_kind.lower()
    except Exception:
        return ""


def focal_loss(logits, targets, alpha=1.0, gamma=2.0, reduction="mean",
               *, num_splits=None, tile_n=None, interpret=False):
    """logits: (N, C) float (f32 or bf16); targets: (N,) int class ids."""
    assert logits.ndim == 2, "expected (N, C) logits"
    n, c = logits.shape
    targets2d = targets.astype(jnp.int32).reshape(n, 1)

    kind = _device_kind()
    is_v5 = "v5" in kind
    is_v6 = "v6" in kind
    is_v7 = ("v7" in kind) or ("7x" in kind)

    # Per-generation working-set budget for one tile (double-buffered input +
    # f32 cast + shifted + exps) and scoped-VMEM limit.
    if is_v5:
        budget, vmem_limit = 24 << 20, 96 << 20      # 128 MiB physical VMEM
    elif is_v6:
        budget, vmem_limit = 32 << 20, 96 << 20      # 128 MiB physical VMEM
    elif is_v7:
        budget, vmem_limit = 16 << 20, 48 << 20      # 64 MiB physical VMEM / TC
    else:
        budget, vmem_limit = 16 << 20, 48 << 20      # conservative default

    # Megacore: only v7x has 2 TensorCores per chip. Elsewhere a split axis is
    # just a serial loop plus padding, so default to a single split.
    if num_splits is None:
        num_splits = 2 if is_v7 else 1
    num_splits = max(1, int(num_splits))

    itemsize = jnp.dtype(logits.dtype).itemsize
    # f32 working set per row: 2x double-buffered input + ~3 live f32 temps.
    bytes_per_row = c * (2 * itemsize + 3 * 4)
    if tile_n is None:
        tile_n = budget // max(1, bytes_per_row)
        tile_n = max(128, min(8192, (tile_n // 128) * 128))
        n_up = -(-n // 128) * 128
        tile_n = min(tile_n, max(128, n_up))         # don't tile past problem size
    else:
        tile_n = max(8, (int(tile_n) // 8) * 8)      # sublane multiple of 8

    lane_pack = (tile_n % 128 == 0)

    tiles_total = -(-n // tile_n)
    tiles_per_split = -(-tiles_total // num_splits)
    n_padded = num_splits * tiles_per_split * tile_n

    if n_padded != n:
        logits = jnp.pad(logits, ((0, n_padded - n), (0, 0)))
        targets2d = jnp.pad(targets2d, ((0, n_padded - n), (0, 0)))

    # Keep bf16 through row_max/shift on bf16-capable VPUs (v6e/v7x); v5e has
    # no bf16 VALU so cast up front there.
    keep_bf16 = (logits.dtype == jnp.bfloat16) and not is_v5

    acc_shape = (tile_n // 128, 128) if lane_pack else (1, 1)

    kernel = functools.partial(
        _focal_loss_kernel,
        n_true=n, tile_n=tile_n, tiles_per_split=tiles_per_split,
        alpha=float(alpha), gamma=float(gamma),
        lane_pack=lane_pack, keep_bf16=keep_bf16)

    if is_v7 and num_splits > 1:
        lead_sem = pltpu.CORE_PARALLEL    # actually shard the split axis across the 2 TCs
    else:
        lead_sem = pltpu.PARALLEL

    out = pl.pallas_call(
        kernel,
        out_shape=jax.ShapeDtypeStruct((num_splits * 8, 128), jnp.float32),
        grid_spec=pltpu.PrefetchScalarGridSpec(
            num_scalar_prefetch=0,
            grid=(num_splits, tiles_per_split),
            in_specs=[
                pl.BlockSpec((tile_n, c),
                             lambda s, t: (s * tiles_per_split + t, 0)),
                pl.BlockSpec((tile_n, 1),
                             lambda s, t: (s * tiles_per_split + t, 0)),
            ],
            out_specs=pl.BlockSpec((8, 128), lambda s, t: (s, 0)),
            scratch_shapes=[pltpu.VMEM(acc_shape, jnp.float32)],
        ),
        compiler_params=pltpu.CompilerParams(
            dimension_semantics=(lead_sem, pltpu.ARBITRARY),
            vmem_limit_bytes=vmem_limit,
        ),
        interpret=interpret,
    )(logits, targets2d)

    partials = out.reshape(num_splits, 8, 128)[:, 0, 0]
    total = jnp.sum(partials)
    if reduction == "mean":
        return total / n
    elif reduction == "sum":
        return total
    else:
        # TODO(synk): reduction='none' (per-sample vector output) not implemented.
        raise NotImplementedError("reduction='none' not supported by this kernel")


def _focal_loss_ref(logits, targets, alpha=1.0, gamma=2.0):
    """Pure-JAX reference for sanity checking."""
    logits = logits.astype(jnp.float32)
    lse = jax.nn.logsumexp(logits, axis=-1)
    tgt_logit = jnp.take_along_axis(logits, targets[:, None], axis=-1)[:, 0]
    ce = lse - tgt_logit
    pt = jnp.exp(-ce)
    focal = alpha * (1.0 - pt) ** gamma * ce
    return jnp.mean(focal)


if __name__ == "__main__":
    key = jax.random.PRNGKey(0)
    k1, k2, k3, k4 = jax.random.split(key, 4)

    # Small test consistent with the module: batch of 8 samples, 32 classes.
    N, C = 8, 32
    logits = jax.random.normal(k1, (N, C), dtype=jnp.float32)
    targets = jax.random.randint(k2, (N,), 0, C, dtype=jnp.int32)

    out = jax.block_until_ready(focal_loss(logits, targets))
    ref = _focal_loss_ref(logits, targets)
    assert jnp.allclose(out, ref, atol=1e-5, rtol=1e-5), (out, ref)

    # Multi-tile accumulation + ragged-tail masking (lane-dense path).
    N2, C2 = 300, 128
    logits2 = jax.random.normal(k3, (N2, C2), dtype=jnp.float32)
    targets2 = jax.random.randint(k4, (N2,), 0, C2, dtype=jnp.int32)
    out2 = jax.block_until_ready(focal_loss(logits2, targets2, tile_n=128))
    ref2 = _focal_loss_ref(logits2, targets2)
    assert jnp.allclose(out2, ref2, atol=1e-5, rtol=1e-5), (out2, ref2)

    # Column-fallback path (tile_n not a multiple of 128) + reduction='sum'.
    out3 = jax.block_until_ready(
        focal_loss(logits2, targets2, tile_n=64, reduction="sum"))
    ref3 = _focal_loss_ref(logits2, targets2) * N2
    assert jnp.allclose(out3, ref3, atol=1e-4, rtol=1e-5), (out3, ref3)

    print("KERNEL_OK")
</pallas_src>

<mosaic_0001>
module attributes {stable_mosaic.version = 11 : i64} {
  func.func @_focal_loss_kernel(%arg0: i32, %arg1: i32, %arg2: memref<128x32xf32, #tpu.memory_space<vmem>>, %arg3: memref<128x1xi32, #tpu.memory_space<vmem>>, %arg4: memref<8x128xf32, #tpu.memory_space<vmem>>, %arg5: memref<1x128xf32, #tpu.memory_space<vmem>>) attributes {dimension_semantics = [#tpu.dimension_semantics<parallel>, #tpu.dimension_semantics<arbitrary>], iteration_bounds = array<i64: 1, 1>, scalar_prefetch = 0 : i64, scratch_operands = 1 : i64, tpu.core_type = #tpu.core_type<tc>, window_params = [{transform_indices = @transform_0, window_bounds = array<i64: 128, 32>}, {transform_indices = @transform_1, window_bounds = array<i64: 128, 1>}, {transform_indices = @transform_2, window_bounds = array<i64: 8, 128>}]} {
    %c0_i32 = arith.constant 0 : i32
    %0 = arith.cmpi eq, %arg1, %c0_i32 : i32
    %1 = arith.extui %0 : i1 to i32
    %c0_i32_0 = arith.constant 0 : i32
    %2 = arith.cmpi ne, %1, %c0_i32_0 : i32
    scf.if %2 {
      %cst_16 = arith.constant 0.000000e+00 : f32
      %49 = vector.broadcast %cst_16 : f32 to vector<1x128xf32>
      %c0_17 = arith.constant 0 : index
      %c0_18 = arith.constant 0 : index
      %50 = vector.load %arg5[%c0_17, %c0_18] : memref<1x128xf32, #tpu.memory_space<vmem>>, vector<1x128xf32>
      tpu.vector_store %arg5[%c0_17, %c0_18], %49 {strides = array<i32>} : memref<1x128xf32, #tpu.memory_space<vmem>>, vector<1x128xf32>,
    } else {
    }
    %c0 = arith.constant 0 : index
    %c0_1 = arith.constant 0 : index
    %3 = vector.load %arg2[%c0, %c0_1] : memref<128x32xf32, #tpu.memory_space<vmem>>, vector<128x32xf32>
    %c0_2 = arith.constant 0 : index
    %c0_3 = arith.constant 0 : index
    %4 = vector.load %arg3[%c0_2, %c0_3] : memref<128x1xi32, #tpu.memory_space<vmem>>, vector<128x1xi32>
    %cst = arith.constant dense<0xFF800000> : vector<128xf32>
    %5 = vector.multi_reduction <maximumf>, %3, %cst [1] : vector<128x32xf32> to vector<128xf32>
    %6 = vector.shape_cast %5 : vector<128xf32> to vector<128x1xf32>
    %7 = vector.broadcast %6 : vector<128x1xf32> to vector<128x32xf32>
    %8 = arith.subf %3, %7 : vector<128x32xf32>
    %9 = math.exp %8 : vector<128x32xf32>
    %cst_4 = arith.constant dense<0.000000e+00> : vector<128xf32>
    %10 = vector.multi_reduction <add>, %9, %cst_4 [1] : vector<128x32xf32> to vector<128xf32>
    %11 = vector.shape_cast %10 : vector<128xf32> to vector<128x1xf32>
    %12 = tpu.iota {dimensions = array<i32: 1>} : vector<1x32xi32>
    %13 = vector.broadcast %12 : vector<1x32xi32> to vector<128x32xi32>
    %14 = vector.broadcast %4 : vector<128x1xi32> to vector<128x32xi32>
    %15 = arith.cmpi eq, %13, %14 : vector<128x32xi32>
    %c0_i32_5 = arith.constant 0 : i32
    %16 = arith.sitofp %c0_i32_5 : i32 to f32
    %17 = vector.broadcast %16 : f32 to vector<128x32xf32>
    %18 = arith.select %15, %8, %17 : vector<128x32xi1>, vector<128x32xf32>
    %cst_6 = arith.constant dense<0.000000e+00> : vector<128xf32>
    %19 = vector.multi_reduction <add>, %18, %cst_6 [1] : vector<128x32xf32> to vector<128xf32>
    %20 = vector.shape_cast %19 : vector<128xf32> to vector<128x1xf32>
    %c1_i32 = arith.constant 1 : i32
    %21 = arith.muli %arg0, %c1_i32 : i32
    %22 = arith.addi %21, %arg1 : i32
    %c128_i32 = arith.constant 128 : i32
    %23 = arith.muli %22, %c128_i32 : i32
    %24 = vector.shape_cast %11 : vector<128x1xf32> to vector<1x128xf32>
    %25 = vector.shape_cast %20 : vector<128x1xf32> to vector<1x128xf32>
    %26 = math.log %24 : vector<1x128xf32>
    %27 = arith.subf %26, %25 : vector<1x128xf32>
    %cst_7 = arith.constant 0.000000e+00 : f32
    %28 = vector.broadcast %cst_7 : f32 to vector<1x128xf32>
    %29 = arith.subf %28, %27 : vector<1x128xf32>
    %30 = math.exp %29 : vector<1x128xf32>
    %cst_8 = arith.constant 1.000000e+00 : f32
    %31 = vector.broadcast %cst_8 : f32 to vector<1x128xf32>
    %32 = arith.subf %31, %30 : vector<1x128xf32>
    %cst_9 = arith.constant 0.000000e+00 : f32
    %33 = vector.broadcast %cst_9 : f32 to vector<1x128xf32>
    %34 = arith.maximumf %32, %33 : vector<1x128xf32>
    %35 = arith.mulf %34, %34 : vector<1x128xf32>
    %cst_10 = arith.constant 1.000000e+00 : f32
    %36 = vector.broadcast %cst_10 : f32 to vector<1x128xf32>
    %37 = arith.mulf %36, %35 : vector<1x128xf32>
    %38 = arith.mulf %37, %27 : vector<1x128xf32>
    %c128_i32_11 = arith.constant 128 : i32
    %39 = arith.addi %23, %c128_i32_11 : i32
    %c8_i32 = arith.constant 8 : i32
    %40 = arith.cmpi sgt, %39, %c8_i32 : i32
    %41 = arith.extui %40 : i1 to i32
    %c0_i32_12 = arith.constant 0 : i32
    %42 = arith.cmpi ne, %41, %c0_i32_12 : i32
    scf.if %42 {
      %49 = tpu.iota {dimensions = array<i32: 0>} : vector<1x128xi32>
      %c128_i32_16 = arith.constant 128 : i32
      %50 = vector.broadcast %c128_i32_16 : i32 to vector<1x128xi32>
      %51 = arith.muli %49, %50 : vector<1x128xi32>
      %52 = tpu.iota {dimensions = array<i32: 1>} : vector<1x128xi32>
      %53 = arith.addi %51, %52 : vector<1x128xi32>
      %54 = vector.broadcast %23 : i32 to vector<1x128xi32>
      %55 = arith.addi %54, %53 : vector<1x128xi32>
      %c0_17 = arith.constant 0 : index
      %c0_18 = arith.constant 0 : index
      %56 = vector.load %arg5[%c0_17, %c0_18] : memref<1x128xf32, #tpu.memory_space<vmem>>, vector<1x128xf32>
      %c8_i32_19 = arith.constant 8 : i32
      %57 = vector.broadcast %c8_i32_19 : i32 to vector<1x128xi32>
      %58 = arith.cmpi slt, %55, %57 : vector<1x128xi32>
      %cst_20 = arith.constant 0.000000e+00 : f32
      %59 = vector.broadcast %cst_20 : f32 to vector<1x128xf32>
      %60 = arith.select %58, %38, %59 : vector<1x128xi1>, vector<1x128xf32>
      %61 = arith.addf %56, %60 : vector<1x128xf32>
      %c0_21 = arith.constant 0 : index
      %c0_22 = arith.constant 0 : index
      %62 = vector.load %arg5[%c0_21, %c0_22] : memref<1x128xf32, #tpu.memory_space<vmem>>, vector<1x128xf32>
      tpu.vector_store %arg5[%c0_21, %c0_22], %61 {strides = array<i32>} : memref<1x128xf32, #tpu.memory_space<vmem>>, vector<1x128xf32>,
    } else {
    }
    %true = arith.constant true
    %43 = arith.xori %40, %true : i1
    %44 = arith.extui %43 : i1 to i32
    %c0_i32_13 = arith.constant 0 : i32
    %45 = arith.cmpi ne, %44, %c0_i32_13 : i32
    scf.if %45 {
      %c0_16 = arith.constant 0 : index
      %c0_17 = arith.constant 0 : index
      %49 = vector.load %arg5[%c0_16, %c0_17] : memref<1x128xf32, #tpu.memory_space<vmem>>, vector<1x128xf32>
      %50 = arith.addf %49, %38 : vector<1x128xf32>
      %c0_18 = arith.constant 0 : index
      %c0_19 = arith.constant 0 : index
      %51 = vector.load %arg5[%c0_18, %c0_19] : memref<1x128xf32, #tpu.memory_space<vmem>>, vector<1x128xf32>
      tpu.vector_store %arg5[%c0_18, %c0_19], %50 {strides = array<i32>} : memref<1x128xf32, #tpu.memory_space<vmem>>, vector<1x128xf32>,
    } else {
    }
    %c0_i32_14 = arith.constant 0 : i32
    %46 = arith.cmpi eq, %arg1, %c0_i32_14 : i32
    %47 = arith.extui %46 : i1 to i32
    %c0_i32_15 = arith.constant 0 : i32
    %48 = arith.cmpi ne, %47, %c0_i32_15 : i32
    scf.if %48 {
      %c0_16 = arith.constant 0 : index
      %c0_17 = arith.constant 0 : index
      %49 = vector.load %arg5[%c0_16, %c0_17] : memref<1x128xf32, #tpu.memory_space<vmem>>, vector<1x128xf32>
      %cst_18 = arith.constant dense<0.000000e+00> : vector<1xf32>
      %50 = vector.multi_reduction <add>, %49, %cst_18 [1] : vector<1x128xf32> to vector<1xf32>
      %51 = vector.shape_cast %50 : vector<1xf32> to vector<1x1xf32>
      %cst_19 = arith.constant dense<0.000000e+00> : vector<1xf32>
      %52 = vector.multi_reduction <add>, %51, %cst_19 [0] : vector<1x1xf32> to vector<1xf32>
      %53 = vector.shape_cast %52 : vector<1xf32> to vector<1x1xf32>
      %54 = vector.shape_cast %53 : vector<1x1xf32> to vector<1x1xf32>
      %55 = vector.broadcast %54 : vector<1x1xf32> to vector<8x128xf32>
      %c0_20 = arith.constant 0 : index
      %c0_21 = arith.constant 0 : index
      %56 = vector.load %arg4[%c0_20, %c0_21] : memref<8x128xf32, #tpu.memory_space<vmem>>, vector<8x128xf32>
      tpu.vector_store %arg4[%c0_20, %c0_21], %55 {strides = array<i32>} : memref<8x128xf32, #tpu.memory_space<vmem>>, vector<8x128xf32>,
    } else {
    }
    return
  }
  func.func @transform_0(%arg0: i32, %arg1: i32) -> (i32, i32) {
    %c1_i32 = arith.constant 1 : i32
    %0 = arith.muli %arg0, %c1_i32 : i32
    %1 = arith.addi %0, %arg1 : i32
    %c0_i32 = arith.constant 0 : i32
    %c0_i32_0 = arith.constant 0 : i32
    return %1, %c0_i32 : i32, i32
  }
  func.func @transform_1(%arg0: i32, %arg1: i32) -> (i32, i32) {
    %c1_i32 = arith.constant 1 : i32
    %0 = arith.muli %arg0, %c1_i32 : i32
    %1 = arith.addi %0, %arg1 : i32
    %c0_i32 = arith.constant 0 : i32
    %c0_i32_0 = arith.constant 0 : i32
    return %1, %c0_i32 : i32, i32
  }
  func.func @transform_2(%arg0: i32, %arg1: i32) -> (i32, i32) {
    %c0_i32 = arith.constant 0 : i32
    %c0_i32_0 = arith.constant 0 : i32
    return %arg0, %c0_i32 : i32, i32
  }
}

</mosaic_0001>

<bundles_post_ra>
// kernel: tpu_custom_call.1
= control target key start
LH: loop header
LB: loop body
LE: loop exit
PB: predicated region body
PF: predicated region fallthrough
CT: control target
= control target key end

     0   :  { %vm93_vm0 = vcmask 261120   ;;  %v2328_v6 = vmov 0   ;;  %s2819_s0 = inlined_call_operand.vmem [shape: f32[128,32], index: 0, kind: input, shape index: {}]   ;;  %s2820_s1 = inlined_call_operand.vmem [shape: s32[128,1], index: 1, kind: input, shape index: {}]   ;;  %s2821_s2 = inlined_call_operand.hbm [shape: f32[8,128], index: 2, kind: output, shape index: {}]  }
   0x1   :  { %v2349_v0 = vld [vmem:[%s2819_s0 + $0x10] sm:$0xff]  ;;  %v2354_v1 = vld [vmem:[%s2819_s0] sm:$0xff]  ;;  %v2359_v2 = vld [vmem:[%s2819_s0 + $0x18] sm:$0xff]  ;;  %2207 = vset.pattern.permute.xlu1 %v2328_v6  ;;  %2206 = vset.pattern.permute.xlu0 %v2328_v6 }
   0x2   :  { %v100_v3 = vsel %vm93_vm0, %v2349_v0, -inf  ;;  %v94_v4 = vsel %vm93_vm0, %v2354_v1, -inf  ;;  %v2368_v5 = vld [vmem:[%s2819_s0 + $0x8] sm:$0xff]  ;;  %v103_v7 = vsel %vm93_vm0, %v2359_v2, -inf  ;;  %v2382_v10 = vld [vmem:[%s2819_s0 + $0x20] sm:$0xff]  ;;  %v2391_v13 = vld [vmem:[%s2819_s0 + $0x38] sm:$0xff] }
   0x3   :  { %101 = vmax.xlane.f32.xlu1 %v100_v3  ;;  %95 = vmax.xlane.f32.xlu0 %v94_v4  ;;  %v97_v8 = vsel %vm93_vm0, %v2368_v5, -inf  ;;  %v2377_v9 = vld [vmem:[%s2819_s0 + $0x28] sm:$0xff]  ;;  %v106_v12 = vsel %vm93_vm0, %v2382_v10, -inf  ;;  %v2396_v14 = vld [vmem:[%s2819_s0 + $0x30] sm:$0xff] }
   0x4   :  { %v109_v11 = vsel %vm93_vm0, %v2377_v9, -inf }
   0x7   :  { %104 = vmax.xlane.f32.xlu1 %v103_v7  ;;  %98 = vmax.xlane.f32.xlu0 %v97_v8 }
   0xb   :  { %110 = vmax.xlane.f32.xlu1 %v109_v11  ;;  %107 = vmax.xlane.f32.xlu0 %v106_v12 }
   0xc   :  { %7 = vsyncpa [#allocation4], 0  ;;  %v115_v15 = vsel %vm93_vm0, %v2391_v13, -inf  ;;  %v112_v16 = vsel %vm93_vm0, %v2396_v14, -inf  ;;  %v2405_v17 = vld [vmem:[%s2819_s0 + $0x48] sm:$0xff]  ;;  %v2410_v18 = vld [vmem:[%s2819_s0 + $0x40] sm:$0xff]  ;;  %v238_v62 = vlaneseq }
   0xd   :  { %v121_v19 = vsel %vm93_vm0, %v2405_v17, -inf  ;;  %v118_v20 = vsel %vm93_vm0, %v2410_v18, -inf  ;;  %v2419_v21 = vld [vmem:[%s2819_s0 + $0x58] sm:$0xff]  ;;  %v2424_v22 = vld [vmem:[%s2819_s0 + $0x50] sm:$0xff]  ;;  %v2433_v25 = vld [vmem:[%s2819_s0 + $0x68] sm:$0xff] }
   0xe   :  { %v127_v23 = vsel %vm93_vm0, %v2419_v21, -inf  ;;  %v124_v24 = vsel %vm93_vm0, %v2424_v22, -inf  ;;  %v2438_v26 = vld [vmem:[%s2819_s0 + $0x60] sm:$0xff]  ;;  %v133_v27 = vsel %vm93_vm0, %v2433_v25, -inf  ;;  %v2447_v29 = vld [vmem:[%s2819_s0 + $0x78] sm:$0xff]  ;;  %v2452_v30 = vld [vmem:[%s2819_s0 + $0x70] sm:$0xff] }
   0xf   :  { %116 = vmax.xlane.f32.xlu1 %v115_v15  ;;  %113 = vmax.xlane.f32.xlu0 %v112_v16  ;;  %v130_v28 = vsel %vm93_vm0, %v2438_v26, -inf  ;;  %v139_v31 = vsel %vm93_vm0, %v2447_v29, -inf  ;;  %v136_v32 = vsel %vm93_vm0, %v2452_v30, -inf  ;;  %v78_v33 = vld [vmem:[%s2820_s1 + $0x8] sm:$0xff]  ;;  %v79_v34 = vld [vmem:[%s2820_s1 + $0x10] sm:$0xff]  ;;  %v77_v35 = vld [vmem:[%s2820_s1] sm:$0xff] }
  0x10   :  { %v80_v36 = vld [vmem:[%s2820_s1 + $0x18] sm:$0xff]  ;;  %v86_v37 = vld [vmem:[%s2820_s1 + $0x48] sm:$0xff]  ;;  %v81_v38 = vld [vmem:[%s2820_s1 + $0x20] sm:$0xff]  ;;  %v2518_v8 = vand.u32 127, %v238_v62 }
  0x11   :  { %v88_v39 = vld [vmem:[%s2820_s1 + $0x58] sm:$0xff]  ;;  %v82_v40 = vld [vmem:[%s2820_s1 + $0x28] sm:$0xff]  ;;  %v83_v42 = vld [vmem:[%s2820_s1 + $0x30] sm:$0xff] }
  0x12   :  { %v90_v41 = vld [vmem:[%s2820_s1 + $0x68] sm:$0xff]  ;;  %v92_v43 = vld [vmem:[%s2820_s1 + $0x78] sm:$0xff]  ;;  %v85_v45 = vld [vmem:[%s2820_s1 + $0x40] sm:$0xff] }
  0x13   :  { %122 = vmax.xlane.f32.xlu1 %v121_v19  ;;  %119 = vmax.xlane.f32.xlu0 %v118_v20  ;;  %v84_v44 = vld [vmem:[%s2820_s1 + $0x38] sm:$0xff]  ;;  %v87_v46 = vld [vmem:[%s2820_s1 + $0x50] sm:$0xff]  ;;  %v89_v47 = vld [vmem:[%s2820_s1 + $0x60] sm:$0xff] }
  0x14   :  { %v91_v48 = vld [vmem:[%s2820_s1 + $0x70] sm:$0xff]  ;;  %s2330_s1 = smov [#allocation3]  }
  0x15   :  { %s2183_s16 = sshll.u32 %s2330_s1, 4  ;;  %s2184_s16 = int_to_ptr.vmem [resolvable:$true] %s2183_s16 }
  0x16   :  { %s2304_s0 = scalar_lea.vmem %s2184_s16, 128  ;;  %p2309_p1 = scmp.lt.s32.totalorder %s2184_s16, %s2184_s16 }
  0x17   :  { %128 = vmax.xlane.f32.xlu1 %v127_v23  ;;  %125 = vmax.xlane.f32.xlu0 %v124_v24  ;;  %p2305_p0 = scmp.ne.s32.totalorder %s2184_s16, %s2304_s0  ;;  %p2310_p2 = scmp.lt.s32.totalorder %s2304_s0, %s2304_s0 }
  0x19   :  { %p2311_p3 = por %p2310_p2, %p2309_p1 }
  0x1b   :  { %134 = vmax.xlane.f32.xlu1 %v133_v27  ;;  %131 = vmax.xlane.f32.xlu0 %v130_v28  ;;  %p2312_p4 = pnand %p2311_p3, %p2305_p0 }
  0x1f   :  { %140 = vmax.xlane.f32.xlu1 %v139_v31  ;;  %137 = vmax.xlane.f32.xlu0 %v136_v32 }
  0x30   :  { %244 = vperm.xlu1 %2207, %v78_v33  }
  0x34   :  { %247 = vperm.xlu1 %2207, %v79_v34  }
  0x35   :  { %241 = vperm.xlu0 %2206, %v77_v35  }
  0x38   :  { %250 = vperm.xlu1 %2207, %v80_v36  }
  0x39   :  { %268 = vperm.xlu0 %2206, %v86_v37  }
  0x3c   :  { %253 = vperm.xlu1 %2207, %v81_v38  }
  0x3d   :  { %274 = vperm.xlu0 %2206, %v88_v39  }
  0x40   :  { %256 = vperm.xlu1 %2207, %v82_v40  }
  0x41   :  { %280 = vperm.xlu0 %2206, %v90_v41  }
  0x44   :  { %259 = vperm.xlu1 %2207, %v83_v42  }
  0x45   :  { %286 = vperm.xlu0 %2206, %v92_v43  }
  0x48   :  { %262 = vperm.xlu1 %2207, %v84_v44  }
  0x4c   :  { %265 = vperm.xlu1 %2207, %v85_v45  }
  0x50   :  { %271 = vperm.xlu1 %2207, %v87_v46  }
  0x54   :  { %277 = vperm.xlu1 %2207, %v89_v47  }
  0x58   :  { %283 = vperm.xlu1 %2207, %v91_v48  }
  0x90   :  { %v102_v49 = vpop.xlane.xlu1 %101  ;;  %v96_v50 = vpop.xlane.xlu0 %95 }
  0x91   :  { %v142_v63 = vsub.f32 %v2354_v1, %v96_v50  ;;  %v144_v12 = vsub.f32 %v2349_v0, %v102_v49 }
  0x93   :  { %v158_v11 = vmul.f32 1.442695, %v142_v63  ;;  %v162_v23 = vmul.f32 1.442695, %v144_v12 }
  0x94   :  { %v105_v51 = vpop.xlane.xlu1 %104  ;;  %v99_v52 = vpop.xlane.xlu0 %98 }
  0x95   :  { %v145_v4 = vsub.f32 %v2359_v2, %v105_v51  ;;  %v143_v7 = vsub.f32 %v2368_v5, %v99_v52  ;;  %2208 = vpow2.f32 %v158_v11 }
  0x97   :  { %v164_v15 = vmul.f32 1.442695, %v145_v4  ;;  %v160_v20 = vmul.f32 1.442695, %v143_v7 }
  0x98   :  { %v111_v53 = vpop.xlane.xlu1 %110  ;;  %v108_v54 = vpop.xlane.xlu0 %107 }
  0x99   :  { %v2525_v1 = vsub.f32 %v2377_v9, %v111_v53  ;;  %2210 = vpow2.f32 %v164_v15  ;;  %v146_v0 = vsub.f32 %v2382_v10, %v108_v54 }
  0x9a   :  { %2212 = vpow2.f32 %v160_v20 }
  0x9b   :  { %v168_v28 = vmul.f32 1.442695, %v2525_v1  ;;  %2214 = vpow2.f32 %v162_v23  ;;  %v166_v10 = vmul.f32 1.442695, %v146_v0 }
  0x9c   :  { %v117_v55 = vpop.xlane.xlu1 %116  ;;  %v114_v56 = vpop.xlane.xlu0 %113 }
  0x9d   :  { %v2533_v9 = vsub.f32 %v2391_v13, %v117_v55  ;;  %v2538_v36 = vsub.f32 %v2396_v14, %v114_v56  ;;  %2216 = vpow2.f32 %v168_v28 }
  0x9e   :  { %2218 = vpow2.f32 %v166_v10 }
  0x9f   :  { %v172_v13 = vmul.f32 1.442695, %v2533_v9  ;;  %v2209_v40 = vpop.eup %2208  ;;  %v170_v42 = vmul.f32 1.442695, %v2538_v36 }
  0xa0   :  { %v123_v57 = vpop.xlane.xlu1 %122  ;;  %v120_v58 = vpop.xlane.xlu0 %119  ;;  %v190_v48 = vsel %vm93_vm0, %v2209_v40, 0.0 }
  0xa1   :  { %v2543_v37 = vsub.f32 %v2405_v17, %v123_v57  ;;  %v2548_v14 = vsub.f32 %v2410_v18, %v120_v58  ;;  %2220 = vpow2.f32 %v172_v13 }
  0xa2   :  { %2222 = vpow2.f32 %v170_v42 }
  0xa3   :  { %v2211_v43 = vpop.eup %2210  ;;  %v176_v44 = vmul.f32 1.442695, %v2543_v37  ;;  %v174_v18 = vmul.f32 1.442695, %v2548_v14 }
  0xa4   :  { %v129_v59 = vpop.xlane.xlu1 %128  ;;  %v2506_v60 = vpop.xlane.xlu0 %125  ;;  %v199_v53 = vsel %vm93_vm0, %v2211_v43, 0.0 }
  0xa5   :  { %v2553_v17 = vsub.f32 %v2419_v21, %v129_v59  ;;  %v2213_v46 = vpop.eup %2212  ;;  %v2560_v49 = vsub.f32 %v2424_v22, %v2506_v60  ;;  %2224 = vpow2.f32 %v176_v44 }
  0xa6   :  { %v2215_v51 = vpop.eup %2214  ;;  %v193_v52 = vsel %vm93_vm0, %v2213_v46, 0.0  ;;  %2226 = vpow2.f32 %v174_v18 }
  0xa7   :  { %v180_v50 = vmul.f32 1.442695, %v2553_v17  ;;  %v2217_v54 = vpop.eup %2216  ;;  %v178_v55 = vmul.f32 1.442695, %v2560_v49  ;;  %v196_v59 = vsel %vm93_vm0, %v2215_v51, 0.0 }
  0xa8   :  { %v2508_v61 = vpop.xlane.xlu1 %134  ;;  %v2511_v3 = vpop.xlane.xlu0 %131  ;;  %v205_v60 = vsel %vm93_vm0, %v2217_v54, 0.0 }
  0xa9   :  { %v2565_v21 = vsub.f32 %v2433_v25, %v2508_v61  ;;  %v2572_v22 = vsub.f32 %v2438_v26, %v2511_v3  ;;  %2228 = vpow2.f32 %v180_v50  ;;  %v2219_v58 = vpop.eup %2218 }
  0xaa   :  { %2230 = vpow2.f32 %v178_v55 }
  0xab   :  { %v184_v56 = vmul.f32 1.442695, %v2565_v21  ;;  %v2221_v61 = vpop.eup %2220  ;;  %v182_v26 = vmul.f32 1.442695, %v2572_v22 }
  0xac   :  { %v2514_v6 = vpop.xlane.xlu1 %140  ;;  %v2521_v16 = vpop.xlane.xlu0 %137 }
  0xad   :  { %v2577_v25 = vsub.f32 %v2447_v29, %v2514_v6  ;;  %2232 = vpow2.f32 %v184_v56  ;;  %v2585_v3 = vsub.f32 %v2452_v30, %v2521_v16  ;;  %v2223_v29 = vpop.eup %2222  ;;  %v211_v6 = vsel %vm93_vm0, %v2221_v61, 0.0 }
  0xae   :  { %2234 = vpow2.f32 %v182_v26 }
  0xb0   :  { %v245_v19 = vpop.permute.xlu1 %244 }
  0xb1   :  { %vm289_vm1 = vcmp.eq.s32.totalorder %v2518_v8, %v245_v19  ;;  %v208_v19 = vsel %vm93_vm0, %v2223_v29, 0.0 }
  0xb2   :  { %v305_v2 = vsel %vm289_vm1, %v143_v7, 0.0  ;;  %v2225_v7 = vpop.eup %2224 }
  0xb3   :  { %v323_v5 = vsel %vm93_vm0, %v305_v2, 0.0  ;;  %v2227_v15 = vpop.eup %2226  ;;  %v217_v20 = vsel %vm93_vm0, %v2225_v7, 0.0 }
  0xb4   :  { %v248_v24 = vpop.permute.xlu1 %247  ;;  %324 = vadd.xlane.f32.xlu0 %v323_v5  ;;  %v242_v27 = vpop.permute.xlu0 %241  ;;  %v214_v5 = vsel %vm93_vm0, %v2227_v15, 0.0 }
  0xb5   :  { %vm290_vm2 = vcmp.eq.s32.totalorder %v2518_v8, %v248_v24  ;;  %vm288_vm3 = vcmp.eq.s32.totalorder %v2518_v8, %v242_v27  ;;  %v2229_v30 = vpop.eup %2228 }
  0xb6   :  { %v306_v31 = vsel %vm290_vm2, %v144_v12, 0.0  ;;  %v304_v32 = vsel %vm288_vm3, %v142_v63, 0.0  ;;  %v188_v63 = vmul.f32 1.442695, %v2577_v25  ;;  %v186_v12 = vmul.f32 1.442695, %v2585_v3  ;;  %v2231_v2 = vpop.eup %2230 }
  0xb7   :  { %v326_v33 = vsel %vm93_vm0, %v306_v31, 0.0  ;;  %v320_v34 = vsel %vm93_vm0, %v304_v32, 0.0  ;;  %v223_v23 = vsel %vm93_vm0, %v2229_v30, 0.0  ;;  %v2233_v24 = vpop.eup %2232  ;;  %vm575_vm2 = vcmask 195712  }
  0xb8   :  { %v251_v35 = vpop.permute.xlu1 %250  ;;  %327 = vadd.xlane.f32.xlu0 %v326_v33  ;;  %321 = vadd.xlane.f32.xlu1 %v320_v34  ;;  %2236 = vpow2.f32 %v188_v63  ;;  %v2235_v27 = vpop.eup %2234  ;;  %v229_v28 = vsel %vm93_vm0, %v2233_v24, 0.0  ;;  %vm582_vm3 = vcmask 261312  }
  0xb9   :  { %vm291_vm4 = vcmp.eq.s32.totalorder %v2518_v8, %v251_v35  ;;  %2238 = vpow2.f32 %v186_v12  ;;  %v269_v32 = vpop.permute.xlu0 %268  ;;  %v226_v34 = vsel %vm93_vm0, %v2235_v27, 0.0 }
  0xba   :  { %v307_v38 = vsel %vm291_vm4, %v145_v4, 0.0  ;;  %v202_v4 = vsel %vm93_vm0, %v2219_v58, 0.0  ;;  %vm297_vm9 = vcmp.eq.s32.totalorder %v2518_v8, %v269_v32  ;;  %vm589_vm4 = vcmask 326912  }
  0xbb   :  { %v329_v39 = vsel %vm93_vm0, %v307_v38, 0.0 }
  0xbc   :  { %v254_v41 = vpop.permute.xlu1 %253  ;;  %330 = vadd.xlane.f32.xlu1 %v329_v39 }
  0xbd   :  { %vm292_vm5 = vcmp.eq.s32.totalorder %v2518_v8, %v254_v41  ;;  %v275_v38 = vpop.permute.xlu0 %274 }
  0xbe   :  { %v308_v45 = vsel %vm292_vm5, %v146_v0, 0.0  ;;  %v220_v0 = vsel %vm93_vm0, %v2231_v2, 0.0  ;;  %vm299_vm11 = vcmp.eq.s32.totalorder %v2518_v8, %v275_v38  ;;  %vm596_vm5 = vcmask 392512  }
  0xbf   :  { %v332_v47 = vsel %vm93_vm0, %v308_v45, 0.0  ;;  %v315_v50 = vsel %vm299_vm11, %v2553_v17, 0.0  ;;  %vm638_vm11 = vcmask 786112  }
  0xc0   :  { %333 = vadd.xlane.f32.xlu0 %v332_v47  ;;  %191 = vadd.xlane.f32.xlu1 %v190_v48  ;;  %v257_v57 = vpop.permute.xlu1 %256  ;;  %v313_v48 = vsel %vm297_vm9, %v2543_v37, 0.0  ;;  %vm624_vm9 = vcmask 654912  }
  0xc1   :  { %vm293_vm6 = vcmp.eq.s32.totalorder %v2518_v8, %v257_v57  ;;  %v281_v45 = vpop.permute.xlu0 %280 }
  0xc2   :  { %v2237_v31 = vpop.eup %2236  ;;  %v309_v13 = vsel %vm293_vm6, %v2525_v1, 0.0  ;;  %vm301_vm13 = vcmp.eq.s32.totalorder %v2518_v8, %v281_v45  ;;  %vm603_vm6 = vcmask 458112  }
  0xc3   :  { %v235_v35 = vsel %vm93_vm0, %v2237_v31, 0.0  ;;  %v2239_v10 = vpop.eup %2238  ;;  %v335_v41 = vsel %vm93_vm0, %v309_v13, 0.0  ;;  %v317_v54 = vsel %vm301_vm13, %v2565_v21, 0.0  ;;  %v2329_v21 = vmov 0.0  }
  0xc4   :  { %194 = vadd.xlane.f32.xlu0 %v193_v52  ;;  %200 = vadd.xlane.f32.xlu1 %v199_v53  ;;  %v260_v11 = vpop.permute.xlu1 %259  ;;  %v232_v40 = vsel %vm93_vm0, %v2239_v10, 0.0  ;;  %v353_v52 = vsel %vm93_vm0, %v315_v50, 0.0  ;;  %60 = vst [vmem:[#allocation2] sm:$0x1] %v2329_v21  ;;  %vm652_vm13 = vcmask 917312  }
  0xc5   :  { %vm294_vm7 = vcmp.eq.s32.totalorder %v2518_v8, %v260_v11 }
  0xc6   :  { %v310_v42 = vsel %vm294_vm7, %v2538_v36, 0.0  ;;  %v347_v36 = vsel %vm93_vm0, %v313_v48, 0.0  ;;  %vm610_vm7 = vcmask 523712  }
  0xc7   :  { %v338_v1 = vsel %vm93_vm0, %v310_v42, 0.0 }
  0xc8   :  { %197 = vadd.xlane.f32.xlu0 %v196_v59  ;;  %206 = vadd.xlane.f32.xlu1 %v205_v60  ;;  %v263_v16 = vpop.permute.xlu1 %262 }
  0xc9   :  { %vm295_vm8 = vcmp.eq.s32.totalorder %v2518_v8, %v263_v16 }
  0xca   :  { %v311_v43 = vsel %vm295_vm8, %v2533_v9, 0.0  ;;  %vm617_vm8 = vcmask 589312  }
  0xcb   :  { %v341_v44 = vsel %vm93_vm0, %v311_v43, 0.0 }
  0xcc   :  { %203 = vadd.xlane.f32.xlu0 %v202_v4  ;;  %212 = vadd.xlane.f32.xlu1 %v211_v6  ;;  %v266_v33 = vpop.permute.xlu1 %265 }
  0xcd   :  { %vm296_vm10 = vcmp.eq.s32.totalorder %v2518_v8, %v266_v33 }
  0xce   :  { %v312_v47 = vsel %vm296_vm10, %v2548_v14, 0.0  ;;  %v287_v14 = vpop.permute.xlu0 %286  ;;  %vm631_vm10 = vcmask 720512  }
  0xcf   :  { %v344_v9 = vsel %vm93_vm0, %v312_v47, 0.0  ;;  %vm303_vm15 = vcmp.eq.s32.totalorder %v2518_v8, %v287_v14  ;;  %v2657_v14 = vadd.s32 4294967280, %v2518_v8 }
  0xd0   :  { %209 = vadd.xlane.f32.xlu0 %v208_v19  ;;  %218 = vadd.xlane.f32.xlu1 %v217_v20  ;;  %v272_v39 = vpop.permute.xlu1 %271  ;;  %v319_v56 = vsel %vm303_vm15, %v2577_v25, 0.0  ;;  %vm666_vm15 = vcmask 1048512  }
  0xd1   :  { %vm298_vm12 = vcmp.eq.s32.totalorder %v2518_v8, %v272_v39 }
  0xd2   :  { %v314_v18 = vsel %vm298_vm12, %v2560_v49, 0.0  ;;  %v359_v49 = vsel %vm93_vm0, %v317_v54, 0.0  ;;  %vm645_vm12 = vcmask 851712  }
  0xd3   :  { %v350_v51 = vsel %vm93_vm0, %v314_v18, 0.0 }
  0xd4   :  { %215 = vadd.xlane.f32.xlu0 %v214_v5  ;;  %224 = vadd.xlane.f32.xlu1 %v223_v23  ;;  %v278_v46 = vpop.permute.xlu1 %277 }
  0xd5   :  { %vm300_vm14 = vcmp.eq.s32.totalorder %v2518_v8, %v278_v46  ;;  %v2647_v46 = vshrl.u32 %v238_v62, 7 }
  0xd6   :  { %v316_v53 = vsel %vm300_vm14, %v2572_v22, 0.0  ;;  %v365_v22 = vsel %vm93_vm0, %v319_v56, 0.0  ;;  %v2668_v56 = vadd.s32 4294967240, %v2518_v8  ;;  %vm659_vm14 = vcmask 982912  }
  0xd7   :  { %v356_v17 = vsel %vm93_vm0, %v316_v53, 0.0  ;;  %v2663_v53 = vadd.s32 4294967256, %v2518_v8 }
  0xd8   :  { %221 = vadd.xlane.f32.xlu0 %v220_v0  ;;  %230 = vadd.xlane.f32.xlu1 %v229_v28  ;;  %v284_v37 = vpop.permute.xlu1 %283 }
  0xd9   :  { %vm302_vm1 = vcmp.eq.s32.totalorder %v2518_v8, %v284_v37  ;;  %v2660_v37 = vadd.s32 4294967264, %v2518_v8 }
  0xda   :  { %v318_v55 = vsel %vm302_vm1, %v2585_v3, 0.0 }
  0xdb   :  { %v362_v57 = vsel %vm93_vm0, %v318_v55, 0.0  ;;  %vm568_vm0 = vcmask 130112  }
  0xdc   :  { %227 = vadd.xlane.f32.xlu0 %v226_v34  ;;  %236 = vadd.xlane.f32.xlu1 %v235_v35 }
  0xe0   :  { %233 = vadd.xlane.f32.xlu0 %v232_v40  ;;  %336 = vadd.xlane.f32.xlu1 %v335_v41 }
  0xe4   :  { %339 = vadd.xlane.f32.xlu0 %v338_v1  ;;  %342 = vadd.xlane.f32.xlu1 %v341_v44 }
  0xe8   :  { %345 = vadd.xlane.f32.xlu0 %v344_v9  ;;  %348 = vadd.xlane.f32.xlu1 %v347_v36  ;;  %v2650_v9 = vadd.s32 4294967272, %v2518_v8  ;;  %v2653_v36 = vadd.s32 4294967288, %v2518_v8 }
  0xea   :  { %v580_v21 = vsub.s32 %v2650_v9, %v2647_v46 }
  0xec   :  { %351 = vadd.xlane.f32.xlu0 %v350_v51  ;;  %354 = vadd.xlane.f32.xlu1 %v353_v52 }
  0xf0   :  { %357 = vadd.xlane.f32.xlu0 %v356_v17  ;;  %360 = vadd.xlane.f32.xlu1 %v359_v49  ;;  %v561_v17 = vsub.s32 %v2518_v8, %v2647_v46 }
  0xf4   :  { %363 = vadd.xlane.f32.xlu0 %v362_v57  ;;  %366 = vadd.xlane.f32.xlu1 %v365_v22  ;;  %v2671_v57 = vadd.s32 4294967248, %v2518_v8 }
 0x141   :  { %v325_v58 = vpop.xlane.xlu0 %324 }
 0x145   :  { %v322_v59 = vpop.xlane.xlu1 %321  ;;  %v328_v60 = vpop.xlane.xlu0 %327 }
 0x149   :  { %v331_v61 = vpop.xlane.xlu1 %330 }
 0x14d   :  { %v192_v26 = vpop.xlane.xlu1 %191  ;;  %v334_v63 = vpop.xlane.xlu0 %333 }
 0x14e   :  { %2240 = vlog2.f32 %v192_v26  ;;  %v573_v26 = vsub.s32 %v2657_v14, %v2647_v46 }
 0x151   :  { %v201_v29 = vpop.xlane.xlu1 %200  ;;  %v195_v4 = vpop.xlane.xlu0 %194 }
 0x152   :  { %2242 = vlog2.f32 %v201_v29 }
 0x153   :  { %2244 = vlog2.f32 %v195_v4  ;;  %v587_v4 = vsub.s32 %v2660_v37, %v2647_v46 }
 0x155   :  { %v207_v25 = vpop.xlane.xlu1 %206  ;;  %v198_v3 = vpop.xlane.xlu0 %197 }
 0x156   :  { %2246 = vlog2.f32 %v198_v3 }
 0x158   :  { %v2241_v6 = vpop.eup %2240 }
 0x159   :  { %v371_v7 = vmul.f32 0.6931472, %v2241_v6  ;;  %v213_v11 = vpop.xlane.xlu1 %212  ;;  %v204_v12 = vpop.xlane.xlu0 %203 }
 0x15a   :  { %2248 = vlog2.f32 %v204_v12  ;;  %v608_v12 = vsub.s32 %v2668_v56, %v2647_v46 }
 0x15b   :  { %v2632_v15 = vsub.f32 %v371_v7, %v322_v59  ;;  %2250 = vlog2.f32 %v207_v25  ;;  %v594_v25 = vsub.s32 %v2663_v53, %v2647_v46  ;;  %v647_v53 = vadd.s32 4294967192, %v2518_v8 }
 0x15c   :  { %v2243_v19 = vpop.eup %2242 }
 0x15d   :  { %v2245_v20 = vpop.eup %2244  ;;  %v418_v30 = vsub.f32 0.0, %v2632_v15  ;;  %v377_v16 = vmul.f32 0.6931472, %v2243_v19  ;;  %v219_v2 = vpop.xlane.xlu1 %218 }
 0x15e   :  { %v210_v5 = vpop.xlane.xlu0 %209  ;;  %v373_v23 = vmul.f32 0.6931472, %v2245_v20 }
 0x15f   :  { %v434_v24 = vmul.f32 1.442695, %v418_v30  ;;  %v2635_v27 = vsub.f32 %v377_v16, %v331_v61  ;;  %v601_v30 = vsub.s32 %v2671_v57, %v2647_v46  ;;  %v640_v57 = vadd.s32 4294967200, %v2518_v8 }
 0x160   :  { %v2637_v0 = vsub.f32 %v373_v23, %v325_v58  ;;  %v2247_v28 = vpop.eup %2246  ;;  %v566_v58 = vsub.s32 %v2653_v36, %v2647_v46 }
 0x161   :  { %2252 = vpow2.f32 %v434_v24  ;;  %v421_v31 = vsub.f32 0.0, %v2635_v27  ;;  %v225_v32 = vpop.xlane.xlu1 %224  ;;  %v375_v35 = vmul.f32 0.6931472, %v2247_v28  ;;  %v2696_v24 = vadd.s32 4294967232, %v2518_v8 }
 0x162   :  { %v216_v33 = vpop.xlane.xlu0 %215  ;;  %v419_v34 = vsub.f32 0.0, %v2637_v0  ;;  %2254 = vlog2.f32 %v213_v11 }
 0x163   :  { %v440_v10 = vmul.f32 1.442695, %v421_v31  ;;  %v2641_v38 = vsub.f32 %v375_v35, %v328_v60  ;;  %2256 = vlog2.f32 %v210_v5 }
 0x164   :  { %v436_v13 = vmul.f32 1.442695, %v419_v34  ;;  %v2249_v39 = vpop.eup %2248  ;;  %2258 = vlog2.f32 %v219_v2 }
 0x165   :  { %v231_v40 = vpop.xlane.xlu1 %230  ;;  %v420_v42 = vsub.f32 0.0, %v2641_v38  ;;  %v379_v43 = vmul.f32 0.6931472, %v2249_v39  ;;  %v2251_v45 = vpop.eup %2250 }
 0x166   :  { %v222_v41 = vpop.xlane.xlu0 %221  ;;  %2260 = vpow2.f32 %v436_v13  ;;  %v381_v52 = vmul.f32 0.6931472, %v2251_v45 }
 0x167   :  { %2262 = vlog2.f32 %v216_v33  ;;  %v438_v1 = vmul.f32 1.442695, %v420_v42  ;;  %v2644_v44 = vsub.f32 %v379_v43, %v334_v63  ;;  %v2682_v63 = vadd.s32 4294967224, %v2518_v8 }
 0x168   :  { %2264 = vpow2.f32 %v440_v10 }
 0x169   :  { %2266 = vlog2.f32 %v225_v32  ;;  %v237_v47 = vpop.xlane.xlu1 %236  ;;  %v422_v18 = vsub.f32 0.0, %v2644_v44  ;;  %v622_v33 = vsub.s32 %v2682_v63, %v2647_v46  ;;  %v537_v63 = vmul.u32 128, %v2647_v46 }
 0x16a   :  { %v228_v48 = vpop.xlane.xlu0 %227  ;;  %2268 = vpow2.f32 %v438_v1 }
 0x16b   :  { %v2253_v50 = vpop.eup %2252  ;;  %2270 = vlog2.f32 %v222_v41  ;;  %v442_v51 = vmul.f32 1.442695, %v422_v18  ;;  %v615_v18 = vsub.s32 %v2696_v24, %v2647_v46  ;;  %v643_v24 = vsub.s32 %v640_v57, %v2647_v46 }
 0x16c   :  { %v466_v62 = vsub.f32 1.0, %v2253_v50  ;;  %v2255_v54 = vpop.eup %2254  ;;  %2272 = vlog2.f32 %v231_v40 }
 0x16d   :  { %v337_v49 = vpop.xlane.xlu1 %336  ;;  %v2257_v22 = vpop.eup %2256  ;;  %2274 = vpow2.f32 %v442_v51  ;;  %v385_v6 = vmul.f32 0.6931472, %v2255_v54 }
 0x16e   :  { %v234_v55 = vpop.xlane.xlu0 %233  ;;  %v2677_v59 = vsub.f32 %v381_v52, %v337_v49  ;;  %v2259_v60 = vpop.eup %2258  ;;  %v482_v61 = vmax.f32 %v466_v62, 0.0  ;;  %2276 = vlog2.f32 %v228_v48  ;;  %v383_v20 = vmul.f32 0.6931472, %v2257_v22 }
 0x16f   :  { %2278 = vlog2.f32 %v237_v47  ;;  %v389_v10 = vmul.f32 0.6931472, %v2259_v60 }
 0x170   :  { %v2261_v29 = vpop.eup %2260  ;;  %v423_v3 = vsub.f32 0.0, %v2677_v59  ;;  %v498_v31 = vmul.f32 %v482_v61, %v482_v61  ;;  %2280 = vlog2.f32 %v234_v55 }
 0x171   :  { %v2263_v7 = vpop.eup %2262  ;;  %v467_v11 = vsub.f32 1.0, %v2261_v29  ;;  %v343_v19 = vpop.xlane.xlu1 %342 }
 0x172   :  { %v340_v16 = vpop.xlane.xlu0 %339  ;;  %v2265_v2 = vpop.eup %2264  ;;  %v444_v5 = vmul.f32 1.442695, %v423_v3  ;;  %v2693_v23 = vsub.f32 %v385_v6, %v343_v19  ;;  %v387_v13 = vmul.f32 0.6931472, %v2263_v7  ;;  %v514_v51 = vmul.f32 %v498_v31, %v2632_v15 }
 0x173   :  { %v2267_v28 = vpop.eup %2266  ;;  %v2698_v32 = vsub.f32 %v383_v20, %v340_v16  ;;  %v469_v40 = vsub.f32 1.0, %v2265_v2  ;;  %v483_v41 = vmax.f32 %v467_v11, 0.0  ;;  %v2718_v31 = vadd.s32 4294967208, %v2518_v8 }
 0x174   :  { %v2269_v34 = vpop.eup %2268  ;;  %2282 = vpow2.f32 %v444_v5  ;;  %v425_v35 = vsub.f32 0.0, %v2693_v23  ;;  %v393_v49 = vmul.f32 0.6931472, %v2267_v28 }
 0x175   :  { %v2271_v39 = vpop.eup %2270  ;;  %v468_v42 = vsub.f32 1.0, %v2269_v34  ;;  %v424_v43 = vsub.f32 0.0, %v2698_v32  ;;  %v349_v1 = vpop.xlane.xlu1 %348  ;;  %v485_v3 = vmax.f32 %v469_v40, 0.0  ;;  %v499_v6 = vmul.f32 %v483_v41, %v483_v41 }
 0x176   :  { %v346_v45 = vpop.xlane.xlu0 %345  ;;  %v448_v47 = vmul.f32 1.442695, %v425_v35  ;;  %v2704_v48 = vsub.f32 %v389_v10, %v349_v1  ;;  %v2273_v62 = vpop.eup %2272  ;;  %v391_v61 = vmul.f32 0.6931472, %v2271_v39  ;;  %v562_v41 = vrot.slane %v514_v51, %v561_v17 }
 0x177   :  { %v2708_v50 = vsub.f32 %v387_v13, %v346_v45  ;;  %v484_v52 = vmax.f32 %v468_v42, 0.0  ;;  %v446_v54 = vmul.f32 1.442695, %v424_v43  ;;  %v2275_v55 = vpop.eup %2274  ;;  %v397_v34 = vmul.f32 0.6931472, %v2273_v62 }
 0x178   :  { %2284 = vpow2.f32 %v448_v47  ;;  %v427_v22 = vsub.f32 0.0, %v2704_v48  ;;  %v2277_v29 = vpop.eup %2276  ;;  %v470_v7 = vsub.f32 1.0, %v2275_v55  ;;  %v501_v42 = vmul.f32 %v485_v3, %v485_v3 }
 0x179   :  { %v426_v60 = vsub.f32 0.0, %v2708_v50  ;;  %2286 = vpow2.f32 %v446_v54  ;;  %v355_v11 = vpop.xlane.xlu1 %354  ;;  %v500_v5 = vmul.f32 %v484_v52, %v484_v52  ;;  %v2279_v35 = vpop.eup %2278  ;;  %v395_v39 = vmul.f32 0.6931472, %v2277_v29 }
 0x17a   :  { %v352_v19 = vpop.xlane.xlu0 %351  ;;  %v452_v20 = vmul.f32 1.442695, %v427_v22  ;;  %v2713_v15 = vsub.f32 %v393_v49, %v355_v11  ;;  %v486_v28 = vmax.f32 %v470_v7, 0.0  ;;  %v2281_v40 = vpop.eup %2280  ;;  %v515_v43 = vmul.f32 %v499_v6, %v2637_v0 }
 0x17b   :  { %v450_v16 = vmul.f32 1.442695, %v426_v60  ;;  %v2715_v2 = vsub.f32 %v391_v61, %v352_v19  ;;  %v516_v55 = vmul.f32 %v500_v5, %v2641_v38  ;;  %v401_v61 = vmul.f32 0.6931472, %v2279_v35 }
 0x17c   :  { %2288 = vpow2.f32 %v452_v20  ;;  %v429_v10 = vsub.f32 0.0, %v2713_v15  ;;  %v502_v22 = vmul.f32 %v486_v28, %v486_v28  ;;  %v399_v51 = vmul.f32 0.6931472, %v2281_v40 }
 0x17d   :  { %v428_v13 = vsub.f32 0.0, %v2715_v2  ;;  %2290 = vpow2.f32 %v450_v16  ;;  %v361_v1 = vpop.xlane.xlu1 %360  ;;  %v517_v29 = vmul.f32 %v501_v42, %v2635_v27  ;;  %v567_v3 = vrot.slane %v515_v43, %v566_v58 }
 0x17e   :  { %v358_v45 = vpop.xlane.xlu0 %357  ;;  %v2283_v47 = vpop.eup %2282  ;;  %v456_v62 = vmul.f32 1.442695, %v429_v10  ;;  %v2726_v54 = vsub.f32 %v397_v34, %v361_v1  ;;  %v574_v27 = vrot.slane %v516_v55, %v573_v26  ;;  %v518_v36 = vmul.f32 %v502_v22, %v2644_v44 }
 0x17f   :  { %v454_v52 = vmul.f32 1.442695, %v428_v13  ;;  %v2728_v49 = vsub.f32 %v395_v39, %v358_v45  ;;  %v471_v60 = vsub.f32 1.0, %v2283_v47  ;;  %v2749_v42 = vadd.s32 4294967216, %v2518_v8 }
 0x180   :  { %2292 = vpow2.f32 %v456_v62  ;;  %v431_v17 = vsub.f32 0.0, %v2726_v54  ;;  %v569_v26 = vsel %vm568_vm0, %v567_v3, %v562_v41  ;;  %v581_v47 = vrot.slane %v517_v29, %v580_v21 }
 0x181   :  { %v430_v0 = vsub.f32 0.0, %v2728_v49  ;;  %v487_v6 = vmax.f32 %v471_v60, 0.0  ;;  %2294 = vpow2.f32 %v454_v52  ;;  %v367_v38 = vpop.xlane.xlu1 %366  ;;  %v576_v62 = vsel %vm575_vm2, %v574_v27, %v569_v26 }
 0x182   :  { %v364_v7 = vpop.xlane.xlu0 %363  ;;  %v2285_v11 = vpop.eup %2284  ;;  %v460_v19 = vmul.f32 1.442695, %v431_v17  ;;  %v2737_v16 = vsub.f32 %v401_v61, %v367_v38  ;;  %v588_v55 = vrot.slane %v518_v36, %v587_v4  ;;  %v583_v4 = vsel %vm582_vm3, %v581_v47, %v576_v62 }
 0x183   :  { %v458_v20 = vmul.f32 1.442695, %v430_v0  ;;  %v2739_v5 = vsub.f32 %v399_v51, %v364_v7  ;;  %v2287_v28 = vpop.eup %2286  ;;  %v503_v58 = vmul.f32 %v487_v6, %v487_v6  ;;  %v473_v34 = vsub.f32 1.0, %v2285_v11 }
 0x184   :  { %v472_v35 = vsub.f32 1.0, %v2287_v28  ;;  %2296 = vpow2.f32 %v460_v19  ;;  %v433_v10 = vsub.f32 0.0, %v2737_v16  ;;  %v636_v51 = vsub.s32 %v2718_v31, %v2647_v46 }
 0x185   :  { %v432_v13 = vsub.f32 0.0, %v2739_v5  ;;  %v519_v39 = vmul.f32 %v503_v58, %v2677_v59  ;;  %v489_v40 = vmax.f32 %v473_v34, 0.0  ;;  %2298 = vpow2.f32 %v458_v20 }
 0x186   :  { %v2289_v14 = vpop.eup %2288  ;;  %v488_v44 = vmax.f32 %v472_v35, 0.0  ;;  %v464_v43 = vmul.f32 1.442695, %v433_v10  ;;  %v629_v58 = vsub.s32 %v2749_v42, %v2647_v46  ;;  %vm2167_vm0 = vcmask 1040384  }
 0x187   :  { %v462_v1 = vmul.f32 1.442695, %v432_v13  ;;  %v2291_v45 = vpop.eup %2290  ;;  %v505_v59 = vmul.f32 %v489_v40, %v489_v40  ;;  %v475_v52 = vsub.f32 1.0, %v2289_v14  ;;  %v595_v60 = vrot.slane %v519_v39, %v594_v25 }
 0x188   :  { %v504_v22 = vmul.f32 %v488_v44, %v488_v44  ;;  %v474_v41 = vsub.f32 1.0, %v2291_v45  ;;  %2300 = vpow2.f32 %v464_v43  ;;  %v590_v25 = vsel %vm589_vm4, %v588_v55, %v583_v4 }
 0x189   :  { %v521_v61 = vmul.f32 %v505_v59, %v2693_v23  ;;  %v491_v9 = vmax.f32 %v475_v52, 0.0  ;;  %2302 = vpow2.f32 %v462_v1  ;;  %v597_v38 = vsel %vm596_vm5, %v595_v60, %v590_v25  ;;  %v541_v25 = vld [vmem:[#allocation2] sm:$0x1] }
 0x18a   :  { %v2293_v21 = vpop.eup %2292  ;;  %v520_v17 = vmul.f32 %v504_v22, %v2698_v32  ;;  %v490_v0 = vmax.f32 %v474_v41, 0.0  ;;  %v661_v43 = vadd.s32 4294967176, %v2518_v8 }
 0x18b   :  { %v2295_v37 = vpop.eup %2294  ;;  %v507_v29 = vmul.f32 %v491_v9, %v491_v9  ;;  %v477_v3 = vsub.f32 1.0, %v2293_v21  ;;  %v609_v31 = vrot.slane %v521_v61, %v608_v12 }
 0x18c   :  { %v602_v23 = vrot.slane %v520_v17, %v601_v30  ;;  %v506_v6 = vmul.f32 %v490_v0, %v490_v0  ;;  %v476_v32 = vsub.f32 1.0, %v2295_v37  ;;  %v664_v60 = vsub.s32 %v661_v43, %v2647_v46 }
 0x18d   :  { %v523_v7 = vmul.f32 %v507_v29, %v2704_v48  ;;  %v493_v11 = vmax.f32 %v477_v3, 0.0  ;;  %v650_v48 = vsub.s32 %v647_v53, %v2647_v46 }
 0x18e   :  { %v2297_v19 = vpop.eup %2296  ;;  %v604_v20 = vsel %vm603_vm6, %v602_v23, %v597_v38  ;;  %v522_v28 = vmul.f32 %v506_v6, %v2708_v50  ;;  %v492_v27 = vmax.f32 %v476_v32, 0.0 }
 0x18f   :  { %v2299_v30 = vpop.eup %2298  ;;  %v509_v36 = vmul.f32 %v493_v11, %v493_v11  ;;  %v479_v34 = vsub.f32 1.0, %v2297_v19  ;;  %v623_v50 = vrot.slane %v523_v7, %v622_v33  ;;  %v611_v10 = vsel %vm610_vm7, %v609_v31, %v604_v20 }
 0x190   :  { %v616_v56 = vrot.slane %v522_v28, %v615_v18  ;;  %v508_v12 = vmul.f32 %v492_v27, %v492_v27  ;;  %v478_v35 = vsub.f32 1.0, %v2299_v30 }
 0x191   :  { %v525_v13 = vmul.f32 %v509_v36, %v2713_v15  ;;  %v495_v39 = vmax.f32 %v479_v34, 0.0  ;;  %v654_v15 = vadd.s32 4294967184, %v2518_v8 }
 0x192   :  { %v2301_v40 = vpop.eup %2300  ;;  %v618_v42 = vsel %vm617_vm8, %v616_v56, %v611_v10  ;;  %v524_v14 = vmul.f32 %v508_v12, %v2715_v2  ;;  %v494_v18 = vmax.f32 %v478_v35, 0.0 }
 0x193   :  { %v2303_v26 = vpop.eup %2302  ;;  %v511_v44 = vmul.f32 %v495_v39, %v495_v39  ;;  %v481_v1 = vsub.f32 1.0, %v2301_v40  ;;  %v637_v62 = vrot.slane %v525_v13, %v636_v51  ;;  %v625_v59 = vsel %vm624_vm9, %v623_v50, %v618_v42 }
 0x194   :  { %v630_v33 = vrot.slane %v524_v14, %v629_v58  ;;  %v510_v45 = vmul.f32 %v494_v18, %v494_v18  ;;  %v480_v47 = vsub.f32 1.0, %v2303_v26  ;;  %v657_v21 = vsub.s32 %v654_v15, %v2647_v46 }
 0x195   :  { %v527_v2 = vmul.f32 %v511_v44, %v2726_v54  ;;  %v497_v52 = vmax.f32 %v481_v1, 0.0  ;;  %v538_v54 = vadd.s32 %v537_v63, %v2518_v8  ;;  %v2174_v8 = vsub.s32 0, %v2647_v46 }
 0x196   :  { %v632_v55 = vsel %vm631_vm10, %v630_v33, %v625_v59  ;;  %v526_v22 = vmul.f32 %v510_v45, %v2728_v49  ;;  %v496_v41 = vmax.f32 %v480_v47, 0.0 }
 0x197   :  { %v513_v61 = vmul.f32 %v497_v52, %v497_v52  ;;  %v651_v0 = vrot.slane %v527_v2, %v650_v48  ;;  %v639_v51 = vsel %vm638_vm11, %v637_v62, %v632_v55  ;;  %vm542_vm1 = vcmp.lt.s32.totalorder %v538_v54, 8 }
 0x198   :  { %v644_v9 = vrot.slane %v526_v22, %v643_v24  ;;  %v512_v17 = vmul.f32 %v496_v41, %v496_v41 }
 0x199   :  { %v529_v37 = vmul.f32 %v513_v61, %v2737_v16 }
 0x19a   :  { %v646_v4 = vsel %vm645_vm12, %v644_v9, %v639_v51  ;;  %v528_v29 = vmul.f32 %v512_v17, %v2739_v5 }
 0x19b   :  { %v665_v49 = vrot.slane %v529_v37, %v664_v60  ;;  %v653_v53 = vsel %vm652_vm13, %v651_v0, %v646_v4 }
 0x19c   :  { %v658_v3 = vrot.slane %v528_v29, %v657_v21 }
 0x19e   :  { %v660_v23 = vsel %vm659_vm14, %v658_v3, %v653_v53 }
 0x19f   :  { %v667_v6 = vsel %vm666_vm15, %v665_v49, %v660_v23 }
 0x1a0   :  { %v669_v32 = vsel %vm542_vm1, %v667_v6, 0.0 }
 0x1a1   :  { %v670_v38 = vadd.f32 %v669_v32, %v541_v25 }
 0x1a3   :  { %671 = vst [vmem:[#allocation2] sm:$0x1] %v670_v38 }
 0x1aa   :  { %v2166_v16 = vld [vmem:[#allocation2] sm:$0x1] }
 0x1ab   :  { %v2168_v31 = vsel %vm2167_vm0, %v2166_v16, 0.0 }
 0x1ac   :  { %2169 = vadd.xlane.f32.xlu0 %v2168_v31 }
 0x239   :  { %v2170_v5 = vpop.xlane.xlu0 %2169 }
 0x23a   :  { %v2175_v7 = vrot.slane %v2170_v5, %v2174_v8 }
 0x23c   :  { %2176 = vst [vmem:[#allocation3] sm:$0xff] %v2175_v7 }
 0x23d   :  { %2315 = shalt.err (!%p2312_p4)
}
 0x23e   :  { %s2316_s19 = scalar_lea.hbm %s2821_s2, 128 }
 0x23f   :  { %p2317_p5 = scmp.ne.s32.totalorder %s2821_s2, %s2316_s19  ;;  %p2320_p6 = scmp.lt.u32.totalorder %s2316_s19, %s2821_s2 }
 0x241   :  { %p2322_p7 = pnand %p2320_p6, %p2317_p5 }
 0x243   :  { %2325 = shalt.err (!%p2322_p7)
}
 0x244   :  { %2186 = dma.vmem_to_hbm [thread:$0]  %s2184_s16, 128, %s2821_s2, [#allocation4]  }
 0x245   :  { %2326 = dma.done.wait [#allocation4], 128  }
 0x246   :  { %2327 = vsyncadd [#allocation4], 4294967168 }
 0x247   :  { %2190 = vsyncpa [#allocation4], 1 }

</bundles_post_ra>
